<compile_context>
chip_gen: v5e
topology: v5e:2x2
jax: 0.10.0
libtpu: 0.0.40
codegen_flags: <defaults>
</compile_context>

<pallas_src>
import functools

import jax
import jax.numpy as jnp
from jax.experimental import pallas as pl
from jax.experimental.pallas import tpu as pltpu


# ---------------------------------------------------------------------------
# Kernels
# ---------------------------------------------------------------------------

def _layernorm2d_kernel(x_ref, w_ref, b_ref, o_ref, *, eps, inv_c):
    """LayerNorm over the channel (sublane) axis of a (C, T) tile."""
    x = x_ref[...].astype(jnp.float32)                       # (C, T)
    # Single-pass statistics with f32 accumulation.  Strictly per-column: the
    # ragged last spatial block may contain garbage lanes, but those never mix
    # with valid columns and their stores are dropped by Pallas.
    s1 = jnp.sum(x, axis=0, keepdims=True)                   # (1, T)
    s2 = jnp.sum(x * x, axis=0, keepdims=True)                # (1, T)
    mu = s1 * inv_c
    var = jnp.maximum(s2 * inv_c - mu * mu, 0.0)              # biased variance
    inv_std = jax.lax.rsqrt(var + eps)
    y = (x - mu) * inv_std                                    # (C, T)
    w = w_ref[...].astype(jnp.float32)                        # (C, 1)
    b = b_ref[...].astype(jnp.float32)                        # (C, 1)
    o_ref[...] = (w * y + b).astype(o_ref.dtype)


def _layernorm2d_conv1x1_kernel(x_ref, w_ref, b_ref, cw_ref, cb_ref, o_ref, *,
                                eps, inv_c):
    """Fused LayerNorm2d -> pointwise (1x1) conv on the resident (C, T) tile."""
    x = x_ref[...].astype(jnp.float32)                        # (C, T)
    s1 = jnp.sum(x, axis=0, keepdims=True)
    s2 = jnp.sum(x * x, axis=0, keepdims=True)
    mu = s1 * inv_c
    var = jnp.maximum(s2 * inv_c - mu * mu, 0.0)
    inv_std = jax.lax.rsqrt(var + eps)
    y = (w_ref[...].astype(jnp.float32) * ((x - mu) * inv_std)
         + b_ref[...].astype(jnp.float32))                    # (C, T)
    # 1x1 conv over channels == (C_out, C) @ (C, T) MXU matmul; the normalized
    # activation never leaves VMEM between the LN and the conv.
    out = jnp.dot(cw_ref[...].astype(jnp.float32), y,
                  preferred_element_type=jnp.float32)         # (C_out, T)
    out = out + cb_ref[...].astype(jnp.float32)               # (C_out, 1) bcast
    o_ref[...] = out.astype(o_ref.dtype)


# ---------------------------------------------------------------------------
# Tiling helpers
# ---------------------------------------------------------------------------

def _spatial_tile(hw, bytes_per_column, target_block_bytes, n_batch):
    """Pick a lane tile T (multiple of 128, or the full dim if hw <= 128)."""
    if hw <= 128:
        # Single full-width block; block dim == array dim satisfies tiling rules.
        return hw, 1
    t_budget = max(128, (target_block_bytes // max(bytes_per_column, 1)) // 128 * 128)
    T = min(t_budget, (hw // 128) * 128)
    num_t = pl.cdiv(hw, T)
    # v7x has 2 TensorCores sharded over 'parallel' grid axes: make sure the
    # grid has at least 2 steps so neither core sits idle.
    if n_batch * num_t < 2 and T >= 256:
        T = max(128, (T // 2) // 128 * 128)
        num_t = pl.cdiv(hw, T)
    return T, num_t


def _vmem_budget(in_block_bytes, out_block_bytes):
    # Double-buffered input + output tiles, plus resident params / headroom.
    limit = 2 * (in_block_bytes + out_block_bytes) + (4 << 20)
    return int(min(max(limit, 16 << 20), 48 << 20))   # safe on v5e/v6e/v7x


def _x_blockspec(C, T, input_buffering):
    idx = lambda n, t: (n, 0, t)
    if input_buffering is None:
        return pl.BlockSpec((None, C, T), idx)
    return pl.BlockSpec((None, C, T), idx,
                        pipeline_mode=pl.Buffered(input_buffering))


# ---------------------------------------------------------------------------
# Wrappers
# ---------------------------------------------------------------------------

def layernorm2d(x_nchw, weight, bias, eps=1e-6, *,
                target_block_bytes=4 * 1024 * 1024, input_buffering=None):
    """LayerNorm over the channel dim of an NCHW tensor (NAFNet LayerNorm2d)."""
    N, C, H, W = x_nchw.shape
    HW = H * W
    x3 = x_nchw.reshape(N, C, HW)           # layout-preserving view, no transpose
    itemsize = jnp.dtype(x_nchw.dtype).itemsize

    T, num_t = _spatial_tile(HW, C * itemsize, target_block_bytes, N)
    block_bytes = C * T * itemsize
    vmem_limit = _vmem_budget(block_bytes, block_bytes)

    w2 = weight.reshape(C, 1)
    b2 = bias.reshape(C, 1)

    out3 = pl.pallas_call(
        functools.partial(_layernorm2d_kernel, eps=float(eps), inv_c=1.0 / C),
        out_shape=jax.ShapeDtypeStruct((N, C, HW), x_nchw.dtype),
        grid_spec=pltpu.PrefetchScalarGridSpec(
            num_scalar_prefetch=0,
            grid=(N, num_t),
            in_specs=[
                _x_blockspec(C, T, input_buffering),
                # weight / bias: constant block index -> fetched once, resident.
                pl.BlockSpec((C, 1), lambda n, t: (0, 0)),
                pl.BlockSpec((C, 1), lambda n, t: (0, 0)),
            ],
            out_specs=pl.BlockSpec((None, C, T), lambda n, t: (n, 0, t)),
        ),
        compiler_params=pltpu.CompilerParams(
            dimension_semantics=("parallel", "parallel"),
            vmem_limit_bytes=vmem_limit,
        ),
    )(x3, w2, b2)

    return out3.reshape(N, C, H, W)


def layernorm2d_conv1x1(x_nchw, ln_weight, ln_bias, conv_weight, conv_bias,
                        eps=1e-6, *, target_block_bytes=4 * 1024 * 1024,
                        input_buffering=None):
    """Fused NAFBlock norm -> 1x1 conv: LayerNorm2d(x) then (C_out, C) pointwise conv."""
    N, C, H, W = x_nchw.shape
    HW = H * W
    conv_w = conv_weight.reshape(-1, C)      # (C_out, C) (accepts (C_out, C, 1, 1))
    C_out = conv_w.shape[0]
    x3 = x_nchw.reshape(N, C, HW)
    itemsize = jnp.dtype(x_nchw.dtype).itemsize

    T, num_t = _spatial_tile(HW, max(C, C_out) * itemsize, target_block_bytes, N)
    vmem_limit = _vmem_budget(C * T * itemsize, C_out * T * itemsize)

    w2 = ln_weight.reshape(C, 1)
    b2 = ln_bias.reshape(C, 1)
    cb2 = conv_bias.reshape(C_out, 1)

    out3 = pl.pallas_call(
        functools.partial(_layernorm2d_conv1x1_kernel,
                          eps=float(eps), inv_c=1.0 / C),
        out_shape=jax.ShapeDtypeStruct((N, C_out, HW), x_nchw.dtype),
        grid_spec=pltpu.PrefetchScalarGridSpec(
            num_scalar_prefetch=0,
            grid=(N, num_t),
            in_specs=[
                _x_blockspec(C, T, input_buffering),
                pl.BlockSpec((C, 1), lambda n, t: (0, 0)),
                pl.BlockSpec((C, 1), lambda n, t: (0, 0)),
                pl.BlockSpec((C_out, C), lambda n, t: (0, 0)),
                pl.BlockSpec((C_out, 1), lambda n, t: (0, 0)),
            ],
            out_specs=pl.BlockSpec((None, C_out, T), lambda n, t: (n, 0, t)),
        ),
        compiler_params=pltpu.CompilerParams(
            dimension_semantics=("parallel", "parallel"),
            vmem_limit_bytes=vmem_limit,
        ),
    )(x3, w2, b2, conv_w, cb2)

    return out3.reshape(N, C_out, H, W)


# ---------------------------------------------------------------------------
# Pure-JAX references (mirror the PyTorch forward)
# ---------------------------------------------------------------------------

def layernorm2d_ref(x, weight, bias, eps=1e-6):
    mu = jnp.mean(x, axis=1, keepdims=True)
    var = jnp.mean((x - mu) ** 2, axis=1, keepdims=True)
    y = (x - mu) / jnp.sqrt(var + eps)
    C = x.shape[1]
    return weight.reshape(1, C, 1, 1) * y + bias.reshape(1, C, 1, 1)


def conv1x1_ref(x, w, b):
    # x: (N, C, H, W), w: (C_out, C), b: (C_out,)
    return jnp.einsum("nchw,oc->nohw", x, w) + b.reshape(1, -1, 1, 1)


# ---------------------------------------------------------------------------
# Self-test
# ---------------------------------------------------------------------------

if __name__ == "__main__":
    key = jax.random.PRNGKey(0)
    k1, k2, k3, k4, k5 = jax.random.split(key, 5)
    N, C, H, W = 2, 4, 16, 16

    # --- LayerNorm2d, f32, 128-divisible spatial size -----------------------
    x = jax.random.normal(k1, (N, C, H, W), dtype=jnp.float32)
    weight = jnp.ones((C,), dtype=jnp.float32)   # LayerNorm2d.__init__ init
    bias = jnp.zeros((C,), dtype=jnp.float32)
    out = jax.block_until_ready(layernorm2d(x, weight, bias, eps=1e-6))
    ref = layernorm2d_ref(x, weight, bias, eps=1e-6)
    assert out.shape == (N, C, H, W)
    assert jnp.allclose(out, ref, atol=1e-5, rtol=1e-5)

    # --- Ragged spatial size (H*W not a multiple of 128): no host pad/slice --
    xr = jax.random.normal(k2, (N, C, H, W - 1), dtype=jnp.float32)
    out_r = jax.block_until_ready(layernorm2d(xr, weight, bias, eps=1e-6))
    ref_r = layernorm2d_ref(xr, weight, bias, eps=1e-6)
    assert out_r.shape == xr.shape
    assert bool(jnp.all(jnp.isfinite(out_r)))
    assert jnp.allclose(out_r, ref_r, atol=1e-5, rtol=1e-5)

    # --- bf16 activations at the boundary (f32 stats inside the kernel) -----
    xb = x.astype(jnp.bfloat16)
    out_b = jax.block_until_ready(layernorm2d(xb, weight, bias, eps=1e-6))
    ref_b = layernorm2d_ref(xb.astype(jnp.float32), weight, bias, eps=1e-6)
    assert out_b.dtype == jnp.bfloat16
    assert jnp.allclose(out_b.astype(jnp.float32), ref_b, atol=5e-2, rtol=5e-2)

    # --- Fused LayerNorm2d -> 1x1 conv (NAFBlock norm1 -> conv1, DW_Expand=2)
    C_out = 2 * C
    ln_w = 1.0 + 0.5 * jax.random.normal(k3, (C,), dtype=jnp.float32)
    ln_b = jnp.zeros((C,), dtype=jnp.float32)
    conv_w = 0.1 * jax.random.normal(k4, (C_out, C), dtype=jnp.float32)
    conv_b = 0.1 * jax.random.normal(k5, (C_out,), dtype=jnp.float32)
    out_f = jax.block_until_ready(
        layernorm2d_conv1x1(x, ln_w, ln_b, conv_w, conv_b, eps=1e-6))
    ref_f = conv1x1_ref(layernorm2d_ref(x, ln_w, ln_b, eps=1e-6), conv_w, conv_b)
    assert out_f.shape == (N, C_out, H, W)
    assert jnp.allclose(out_f, ref_f, atol=1e-4, rtol=1e-4)

    print("KERNEL_OK")
</pallas_src>

<mosaic_0001>
module attributes {stable_mosaic.version = 11 : i64} {
  func.func @_layernorm2d_kernel(%arg0: i32, %arg1: i32, %arg2: memref<1x4x256xf32, #tpu.memory_space<vmem>>, %arg3: memref<4x1xf32, #tpu.memory_space<vmem>>, %arg4: memref<4x1xf32, #tpu.memory_space<vmem>>, %arg5: memref<1x4x256xf32, #tpu.memory_space<vmem>>) attributes {dimension_semantics = [#tpu.dimension_semantics<parallel>, #tpu.dimension_semantics<parallel>], iteration_bounds = array<i64: 2, 1>, scalar_prefetch = 0 : i64, scratch_operands = 0 : i64, tpu.core_type = #tpu.core_type<tc>, window_params = [{transform_indices = @transform_0, window_bounds = array<i64: 1, 4, 256>}, {pipeline_mode = #tpu.pipeline_mode<synchronous>, transform_indices = @transform_1, window_bounds = array<i64: 4, 1>}, {pipeline_mode = #tpu.pipeline_mode<synchronous>, transform_indices = @transform_2, window_bounds = array<i64: 4, 1>}, {transform_indices = @transform_3, window_bounds = array<i64: 1, 4, 256>}]} {
    %c0 = arith.constant 0 : index
    %c0_0 = arith.constant 0 : index
    %c0_1 = arith.constant 0 : index
    %0 = vector.load %arg2[%c0, %c0_0, %c0_1] : memref<1x4x256xf32, #tpu.memory_space<vmem>>, vector<1x4x256xf32>
    %1 = vector.shape_cast %0 : vector<1x4x256xf32> to vector<4x256xf32>
    %cst = arith.constant dense<0.000000e+00> : vector<256xf32>
    %2 = vector.multi_reduction <add>, %1, %cst [0] : vector<4x256xf32> to vector<256xf32>
    %3 = vector.shape_cast %2 : vector<256xf32> to vector<1x256xf32>
    %4 = arith.mulf %1, %1 : vector<4x256xf32>
    %cst_2 = arith.constant dense<0.000000e+00> : vector<256xf32>
    %5 = vector.multi_reduction <add>, %4, %cst_2 [0] : vector<4x256xf32> to vector<256xf32>
    %6 = vector.shape_cast %5 : vector<256xf32> to vector<1x256xf32>
    %cst_3 = arith.constant 2.500000e-01 : f32
    %7 = vector.broadcast %cst_3 : f32 to vector<1x256xf32>
    %8 = arith.mulf %3, %7 : vector<1x256xf32>
    %cst_4 = arith.constant 2.500000e-01 : f32
    %9 = vector.broadcast %cst_4 : f32 to vector<1x256xf32>
    %10 = arith.mulf %6, %9 : vector<1x256xf32>
    %11 = arith.mulf %8, %8 : vector<1x256xf32>
    %12 = arith.subf %10, %11 : vector<1x256xf32>
    %cst_5 = arith.constant 0.000000e+00 : f32
    %13 = vector.broadcast %cst_5 : f32 to vector<1x256xf32>
    %14 = arith.maximumf %12, %13 : vector<1x256xf32>
    %cst_6 = arith.constant 9.99999997E-7 : f32
    %15 = vector.broadcast %cst_6 : f32 to vector<1x256xf32>
    %16 = arith.addf %14, %15 : vector<1x256xf32>
    %17 = math.rsqrt %16 : vector<1x256xf32>
    %18 = vector.broadcast %8 : vector<1x256xf32> to vector<4x256xf32>
    %19 = arith.subf %1, %18 : vector<4x256xf32>
    %20 = vector.broadcast %17 : vector<1x256xf32> to vector<4x256xf32>
    %21 = arith.mulf %19, %20 : vector<4x256xf32>
    %c0_7 = arith.constant 0 : index
    %c0_8 = arith.constant 0 : index
    %22 = vector.load %arg3[%c0_7, %c0_8] : memref<4x1xf32, #tpu.memory_space<vmem>>, vector<4x1xf32>
    %c0_9 = arith.constant 0 : index
    %c0_10 = arith.constant 0 : index
    %23 = vector.load %arg4[%c0_9, %c0_10] : memref<4x1xf32, #tpu.memory_space<vmem>>, vector<4x1xf32>
    %24 = vector.broadcast %22 : vector<4x1xf32> to vector<4x256xf32>
    %25 = arith.mulf %24, %21 : vector<4x256xf32>
    %26 = vector.broadcast %23 : vector<4x1xf32> to vector<4x256xf32>
    %27 = arith.addf %25, %26 : vector<4x256xf32>
    %c0_11 = arith.constant 0 : index
    %c0_12 = arith.constant 0 : index
    %c0_13 = arith.constant 0 : index
    %28 = vector.load %arg5[%c0_11, %c0_12, %c0_13] : memref<1x4x256xf32, #tpu.memory_space<vmem>>, vector<1x4x256xf32>
    %29 = vector.shape_cast %28 : vector<1x4x256xf32> to vector<4x256xf32>
    %30 = vector.shape_cast %27 : vector<4x256xf32> to vector<1x4x256xf32>
    tpu.vector_store %arg5[%c0_11, %c0_12, %c0_13], %30 {strides = array<i32>} : memref<1x4x256xf32, #tpu.memory_space<vmem>>, vector<1x4x256xf32>,
    return
  }
  func.func @transform_0(%arg0: i32, %arg1: i32) -> (i32, i32, i32) {
    %c0_i32 = arith.constant 0 : i32
    %c0_i32_0 = arith.constant 0 : i32
    return %arg0, %c0_i32, %arg1 : i32, i32, i32
  }
  func.func @transform_1(%arg0: i32, %arg1: i32) -> (i32, i32) {
    %c0_i32 = arith.constant 0 : i32
    %c0_i32_0 = arith.constant 0 : i32
    %c0_i32_1 = arith.constant 0 : i32
    return %c0_i32, %c0_i32_0 : i32, i32
  }
  func.func @transform_2(%arg0: i32, %arg1: i32) -> (i32, i32) {
    %c0_i32 = arith.constant 0 : i32
    %c0_i32_0 = arith.constant 0 : i32
    %c0_i32_1 = arith.constant 0 : i32
    return %c0_i32, %c0_i32_0 : i32, i32
  }
  func.func @transform_3(%arg0: i32, %arg1: i32) -> (i32, i32, i32) {
    %c0_i32 = arith.constant 0 : i32
    %c0_i32_0 = arith.constant 0 : i32
    return %arg0, %c0_i32, %arg1 : i32, i32, i32
  }
}

</mosaic_0001>

<bundles_post_ra>
// kernel: tpu_custom_call.1
= control target key start
LH: loop header
LB: loop body
LE: loop exit
PB: predicated region body
PF: predicated region fallthrough
CT: control target
= control target key end

     0   :  { %8 = vsyncpa [#allocation3], 0  ;;  %s790_s0 = inlined_call_operand.hbm [shape: f32[2,4,256], index: 0, kind: input, shape index: {}]   ;;  %s791_s1 = inlined_call_operand.vmem [shape: f32[4,1], index: 1, kind: input, shape index: {}]   ;;  %s792_s2 = inlined_call_operand.vmem [shape: f32[4,1], index: 2, kind: input, shape index: {}]   ;;  %s793_s3 = inlined_call_operand.hbm [shape: f32[2,4,256], index: 3, kind: output, shape index: {}]  }
   0x1   :  { %10 = vsyncpa [#allocation3 + $0x1], 0 }
   0x2   :  { %11 = vsyncpa [#allocation4], 0 }
   0x3   :  { %13 = vsyncpa [#allocation4 + $0x1], 0  ;;  %s647_s12 = smov 0   ;;  %s649_s13 = smov 0  }
   0x4   :  { %s651_s14 = smov 0   ;;  %s653_s15 = smov 0  }
   0x5   :  { %s655_s16 = smov 0   ;;  %s657_s17 = smov 0  }
   0x6 LB: > { %s427_s18 = sadd.s32 4294967295, %s624_s17   ;;  %s428_s19 = sadd.s32 4294967294, %s624_s17   ;;  %s624_s17 = sphi %s657_s17, %s19_s17   ;;  %s620_s16 = sphi %s655_s16, %s802_s16   ;;  %s616_s15 = sphi %s653_s15, %s801_s15   ;;  %s612_s14 = sphi %s651_s14, %s800_s14   ;;  %s608_s13 = sphi %s649_s13, %s799_s13   ;;  %s604_s12 = sphi %s647_s12, %s798_s12  }
   0x7   : > { %s31_s20 = sadd.s32 1, %s620_s16  ;;  %s40_s21 = sadd.s32 1, %s612_s14 }
   0x8   : > { %p33_p0 = scmp.ge.s32.totalorder %s31_s20, 2  ;;  %p47_p1 = scmp.ne.s32.totalorder %s612_s14, %s608_s13 }
   0x9   : > { %p48_p2 = scmp.eq.s32.totalorder %s624_s17, 0  ;;  %p53_p3 = scmp.ne.s32.totalorder %s608_s13, %s604_s12 }
   0xa   : > { %s804_s20 = smov (%p33_p0, %s31_s20), 0  ;;  %p54_p5 = scmp.eq.s32.totalorder %s427_s18, 0 }
   0xb   : > { %p688_p4 = por %p48_p2, %p47_p1  ;;  %s35_s23 = ssub.s32 %s620_s16, %s804_s20 }
   0xc   : > { %p121_p6 = scmp.eq.s32.totalorder %s427_s18, 1  ;;  %p38_p7 = scmp.eq.s32.totalorder %s35_s23, 0 }
   0xd   : > { %p694_p8 = por %p54_p5, %p53_p3  ;;  %p127_p10 = scmp.eq.s32.totalorder %s428_s19, 1 }
   0xe   : > { %p698_p9 = por %p121_p6, %p47_p1  ;;  %p430_p12 = scmp.ge.s32.totalorder %s624_s17, 2 }
   0xf   : > { %s703_s26 = scalar_select %p38_p7, %s612_s14, %s40_s21  }
  0x10   : > { %p705_p11 = por %p127_p10, %p53_p3  ;;  %p456_p13 = scmp.lt.s32.totalorder %s624_s17, 2 }
  0x11   : > { %s153_s28 = sand.u32 1, %s612_s14   ;;  %s442_s30 = sshll.u32 %s620_s16, 3 }
  0x12   : > { %s431_s29 = sshll.u32 %s153_s28, 3  ;;  %s164_s6 = scalar_lea.hbm %s790_s0, %s442_s30 }
  0x13   : > { %s157_s7 = scalar_lea.vmem [#allocation2], %s431_s29  ;;  %s166_s9 = sshll.u32 %s164_s6, 4  ;;  %s167_s9 = int_to_ptr.hbm [resolvable:$true] %s166_s9 }
  0x14   : > { %s168_s8 = sshll.u32 %s157_s7, 4  ;;  %p449_p0 = pnand %p456_p13, %p688_p4  ;;  %s169_s8 = int_to_ptr.vmem [resolvable:$true] %s168_s8 }
  0x15   : > { %p434_p1 = scmp.ge.s32.totalorder %s624_s17, 1  ;;  %p173_p2 = scmp.lt.s32.totalorder %s624_s17, 3 }
  0x16   : > { %s154_s10 = scalar_lea.sflag [#allocation3], %s153_s28 }
  0x17   : > { %451 = dma.hbm_to_vmem [thread:$0]  (!%p449_p0), %s167_s9, 128, %s169_s8, %s154_s10  }
  0x18   : > { %p174_p3 = pnand %p434_p1, %p173_p2 }
  0x19   : > { %s721_s11 = sand.u32 (!%p174_p3), 1, %s608_s13  }
  0x1a   : > { %177 = sbr.rel (%p174_p3) target bundleno = 165 (0xa5), region = 32  ;;  %s435_s18 = sshll.u32 (!%p174_p3), %s721_s11, 3 }
  0x1b   : > { %s180_s19 = scalar_lea.sflag (!%p174_p3), [#allocation3], %s721_s11  ;;  %s183_s21 = scalar_lea.vmem (!%p174_p3), [#allocation2], %s435_s18 }
  0x1f   : > { %595 = dma.done.wait (%p694_p8), %s180_s19, 128  }
  0x20   : > { %597 = vsyncadd (%p694_p8), %s180_s19, 4294967168  ;;  %v626_v0 = vmov 0   ;;  %v731_v1 = vld [vmem:[%s183_s21] sm:$0xff]  ;;  %v296_v2 = vld [vmem:[%s791_s1] sm:$0xf]  ;;  %vm216_vm0 = vcmask 1043456  }
  0x21   : > { %507 = vset.pattern.permute.xlu0 %v626_v0  ;;  %211 = vst [vmem:[#allocation1] ss:$2 sm:$0xff] %v731_v1  ;;  %v297_v3 = vld [vmem:[%s792_s2] sm:$0xf]  ;;  %v231_v4 = vmul.f32 %v731_v1, %v731_v1  ;;  %s443_s24 = sshll.u32 %s616_s15, 3  ;;  %s206_s6 = scalar_lea.vmem [#allocation5], %s435_s18 }
  0x22   : > { %300 = vperm.xlu0 %507, %v296_v2   ;;  %s338_s5 = scalar_lea.hbm %s793_s3, %s443_s24  ;;  %s340_s7 = sshll.u32 %s206_s6, 4  ;;  %s341_s7 = int_to_ptr.vmem [resolvable:$true] %s340_s7 }
  0x23   : > { %s342_s8 = sshll.u32 %s338_s5, 4  ;;  %s325_s15 = scalar_lea.sflag [#allocation4], %s721_s11  ;;  %s343_s8 = int_to_ptr.hbm [resolvable:$true] %s342_s8 }
  0x24   : > { %s556_s9 = sshra.s32 %s343_s8, 4  ;;  %s562_s18 = scalar_lea.hbm %s793_s3, 16  ;;  %s557_s9 = int_to_ptr.hbm [resolvable:$true] %s556_s9 }
  0x25   : > { %s558_s10 = scalar_lea.hbm %s557_s9, 8  ;;  %p563_p7 = scmp.lt.s32.totalorder %s557_s9, %s793_s3 }
  0x26   : > { %p559_p4 = scmp.ne.s32.totalorder %s557_s9, %s558_s10  ;;  %p564_p8 = scmp.lt.s32.totalorder %s562_s18, %s558_s10 }
  0x28   : > { %v212_v5 = vld.sshfl [vmem:[#allocation1] sm:$0xff pattern:$0x75316420]  ;;  %v213_v6 = vld.sshfl [vmem:[#allocation1 + $0x8] sm:$0xff pattern:$0x75316420]  ;;  %p560_p5 = pnand %p559_p4, %p698_p9  ;;  %p565_p10 = por %p564_p8, %p563_p7 }
  0x29   : > { %233 = vst [vmem:[#allocation1] ss:$2 sm:$0xff] %v231_v4  ;;  %v224_v7 = vsel %vm216_vm0, %v213_v6, 0.0  ;;  %v217_v10 = vsel %vm216_vm0, %v212_v5, 0.0 }
  0x2a   : > { %313 = vperm.xlu0 %507, %v297_v3   ;;  %v225_v8 = vrot.slane %v224_v7, 4  ;;  %v218_v12 = vrot.slane %v217_v10, 4  ;;  %p561_p6 = pneg %p560_p5 }
  0x2c   : > { %v226_v13 = vadd.f32 %v225_v8, %v224_v7  ;;  %v219_v17 = vadd.f32 %v218_v12, %v217_v10  ;;  %p566_p13 = pnand %p565_p10, %p561_p6 }
  0x2e   : > { %v227_v18 = vrot.slane %v226_v13, 2  ;;  %v220_v21 = vrot.slane %v219_v17, 2 }
  0x30   : > { %v235_v9 = vld.sshfl [vmem:[#allocation1 + $0x8] sm:$0xff pattern:$0x75316420]  ;;  %v234_v14 = vld.sshfl [vmem:[#allocation1] sm:$0xff pattern:$0x75316420]  ;;  %v228_v22 = vadd.f32 %v227_v18, %v226_v13  ;;  %v221_v25 = vadd.f32 %v220_v21, %v219_v17 }
  0x31   : > { %v245_v11 = vsel %vm216_vm0, %v235_v9, 0.0  ;;  %v238_v16 = vsel %vm216_vm0, %v234_v14, 0.0 }
  0x32   : > { %v246_v15 = vrot.slane %v245_v11, 4  ;;  %v239_v19 = vrot.slane %v238_v16, 4  ;;  %v229_v26 = vrot.slane %v228_v22, 1  ;;  %v222_v29 = vrot.slane %v221_v25, 1 }
  0x34   : > { %v247_v20 = vadd.f32 %v246_v15, %v245_v11  ;;  %v240_v23 = vadd.f32 %v239_v19, %v238_v16  ;;  %v230_v30 = vadd.f32 %v229_v26, %v228_v22  ;;  %v223_v33 = vadd.f32 %v222_v29, %v221_v25 }
  0x36   : > { %v248_v24 = vrot.slane %v247_v20, 2  ;;  %v241_v27 = vrot.slane %v240_v23, 2  ;;  %v253_v36 = vmul.f32 0.25, %v230_v30  ;;  %v252_v38 = vmul.f32 0.25, %v223_v33 }
  0x38   : > { %v249_v28 = vadd.f32 %v248_v24, %v247_v20  ;;  %v242_v31 = vadd.f32 %v241_v27, %v240_v23  ;;  %v257_v40 = vmul.f32 %v253_v36, %v253_v36  ;;  %v256_v42 = vmul.f32 %v252_v38, %v252_v38 }
  0x39   : > { %v286_v60 = vrot.slane %v253_v36, 4 }
  0x3a   : > { %v250_v32 = vrot.slane %v249_v28, 1  ;;  %v243_v34 = vrot.slane %v242_v31, 1 }
  0x3b   : > { %v287_v63 = vsel %vm216_vm0, %v252_v38, %v286_v60 }
  0x3c   : > { %v251_v35 = vadd.f32 %v250_v32, %v249_v28  ;;  %v244_v37 = vadd.f32 %v243_v34, %v242_v31  ;;  %v289_v3 = vsub.f32 %v731_v1, %v287_v63 }
  0x3e   : > { %v255_v39 = vmul.f32 0.25, %v251_v35  ;;  %v254_v41 = vmul.f32 0.25, %v244_v37 }
  0x40   : > { %v259_v43 = vsub.f32 %v255_v39, %v257_v40  ;;  %v258_v44 = vsub.f32 %v254_v41, %v256_v42 }
  0x42   : > { %v261_v45 = vmax.f32 %v259_v43, 0.0  ;;  %v260_v46 = vmax.f32 %v258_v44, 0.0 }
  0x44   : > { %v263_v47 = vadd.f32 1e-06, %v261_v45  ;;  %v262_v48 = vadd.f32 1e-06, %v260_v46 }
  0x46   : > { %508 = vrsqrt.f32 %v263_v47  ;;  %vm280_vm1 = vweird.f32 %v263_v47  ;;  %vm270_vm4 = vweird.f32 %v262_v48 }
  0x47   : > { %510 = vrsqrt.f32 %v262_v48 }
  0x4c   : > { %v509_v49 = vpop.eup %508 }
  0x4d   : > { %v275_v50 = vmul.f32 %v509_v49, %v263_v47  ;;  %v511_v51 = vpop.eup %510  ;;  %vm281_vm2 = vweird.f32 %v509_v49 }
  0x4e   : > { %v265_v52 = vmul.f32 %v511_v51, %v262_v48  ;;  %vm282_vm3 = vmor %vm280_vm1, %vm281_vm2  ;;  %vm271_vm5 = vweird.f32 %v511_v51 }
  0x4f   : > { %v276_v53 = vmul.f32 %v509_v49, %v275_v50  ;;  %vm272_vm6 = vmor %vm270_vm4, %vm271_vm5 }
  0x50   : > { %v266_v54 = vmul.f32 %v511_v51, %v265_v52 }
  0x51   : > { %v277_v55 = vmul.f32 0.5, %v276_v53 }
  0x52   : > { %v267_v56 = vmul.f32 0.5, %v266_v54 }
  0x53   : > { %v278_v57 = vsub.f32 1.5, %v277_v55 }
  0x54   : > { %v268_v58 = vsub.f32 1.5, %v267_v56 }
  0x55   : > { %v279_v59 = vmul.f32 %v509_v49, %v278_v57 }
  0x56   : > { %v269_v61 = vmul.f32 %v511_v51, %v268_v58 }
  0x57   : > { %v283_v62 = vsel %vm282_vm3, %v509_v49, %v279_v59 }
  0x58   : > { %v292_v0 = vrot.slane %v283_v62, 4  ;;  %v273_v2 = vsel %vm272_vm6, %v511_v51, %v269_v61 }
  0x5a   : > { %v293_v4 = vsel %vm216_vm0, %v273_v2, %v292_v0 }
  0x5b   : > { %v295_v5 = vmul.f32 %v293_v4, %v289_v3 }
  0x5d   : > { %304 = vst [vmem:[#allocation1] ss:$2 sm:$0xff] %v295_v5 }
  0x64   : > { %v306_v7 = vld.sshfl [vmem:[#allocation1 + $0x8] sm:$0xff pattern:$0x75316420]  ;;  %v305_v8 = vld.sshfl [vmem:[#allocation1] sm:$0xff pattern:$0x75316420] }
  0x94   : > { %v301_v6 = vpop.permute.xlu0 %300 }
  0x95   : > { %v310_v9 = vmul.f32 %v306_v7, %v301_v6  ;;  %v309_v11 = vmul.f32 %v305_v8, %v301_v6 }
  0x9c   : > { %v314_v10 = vpop.permute.xlu0 %313 }
  0x9d   : > { %v317_v12 = vadd.f32 %v314_v10, %v310_v9  ;;  %v316_v1 = vadd.f32 %v314_v10, %v309_v11 }
  0x9f   : > { %v320_v13 = vrot.slane %v317_v12, 4 }
  0xa1   : > { %v321_v14 = vsel %vm216_vm0, %v316_v1, %v320_v13 }
  0xa2   : > { %323 = vst [vmem:[%s206_s6] sm:$0xff] %v321_v14 }
  0xa3   : > { %569 = shalt.err (!%p566_p13)
}
  0xa4   : > { %446 = dma.vmem_to_hbm [thread:$0]  (%p698_p9), %s341_s7, 128, %s343_s8, %s325_s15  }
  0xa5 PF: > { %s354_s11 = sand.u32 1, %s604_s12   ;;  %p453_p0 = pnand %p430_p12, %p705_p11 }
  0xa6   : > { %s355_s28 = scalar_lea.sflag [#allocation4], %s354_s11 }
  0xa7   : > { %p454_p1 = pneg %p453_p0 }
  0xa9   : > { %599 = dma.done.wait (%p454_p1), %s355_s28, 128  }
  0xaa   : > { %601 = vsyncadd (%p454_p1), %s355_s28, 4294967168  ;;  %s19_s17 = sadd.s32 1, %s624_s17   ;;  %s798_s12 = smov %s608_s13 }
  0xab   : > { %p16_p2 = scmp.ge.s32.totalorder %s19_s17, 4   ;;  %s799_s13 = smov %s612_s14 }
  0xac   : > { %s800_s14 = smov %s703_s26  ;;  %s801_s15 = smov %s620_s16 }
  0xad   : > { %s802_s16 = smov %s804_s20  ;;  %18 = sbr.rel (!%p16_p2) target bundleno = 6 (0x6), region = 77 }
  0xb2   :  { %361 = vsyncpa [#allocation3], 1 }
  0xb3   :  { %363 = vsyncpa [#allocation3 + $0x1], 1 }
  0xb4   :  { %364 = vsyncpa [#allocation4], 1 }
  0xb5   :  { %366 = vsyncpa [#allocation4 + $0x1], 1 }

</bundles_post_ra>
